<compile_context>
chip_gen: v6e
topology: v6e:2x2x1
jax: 0.10.0
libtpu: 0.0.40
codegen_flags: <defaults>
</compile_context>

<pallas_src>
import functools

import numpy as np
import jax
import jax.numpy as jnp
from jax.experimental import pallas as pl
from jax.experimental.pallas import tpu as pltpu


# Fixed module hyper-parameters (from the PyTorch spec).
IC, OC, KH, KW = 3, 6, 5, 5
FC_OUT = 120
OUT_PAD = 128            # lane-dense padded fc1 output width (multiple of 128)


# ----------------------------------------------------------------------------
# One-time host-side repacking of the PyTorch-layout weights into the
# matmul-friendly layouts the fused kernel consumes.
# ----------------------------------------------------------------------------
def prepare_params(params, in_h, in_w):
    OH, OW = in_h - KH + 1, in_w - KW + 1
    HP, WP = OH // 2, OW // 2

    w_conv = np.asarray(params["conv1_w"], np.float32)   # (OC, IC, KH, KW)
    b_conv = np.asarray(params["conv1_b"], np.float32)   # (OC,)
    w_fc = np.asarray(params["fc1_w"], np.float32)       # (FC_OUT, OC*HP*WP)
    b_fc = np.asarray(params["fc1_b"], np.float32)       # (FC_OUT,)

    # Banded conv weight:
    #   wb[kh, w*IC + ic, ow*OC + oc] = w_conv[oc, ic, kh, w - ow]  (0 <= w-ow < KW)
    # so one (W*IC, OW*OC) matmul per kh realizes the full kw/ic contraction
    # for every output column ow simultaneously.
    wb = np.zeros((KH, in_w * IC, OW * OC), np.float32)
    for kh in range(KH):
        for ow in range(OW):
            for kw in range(KW):
                w = ow + kw
                wb[kh, w * IC:(w + 1) * IC, ow * OC:(ow + 1) * OC] = \
                    w_conv[:, :, kh, kw].T

    bias_conv = np.tile(b_conv, OW).reshape(1, OW * OC).astype(np.float32)

    # Pool-anchor-selecting + NCHW-flatten-permuting + 128-lane-padded fc1 weight:
    #   w_pool_fc[(2*pw)*OC + oc, ph*OUT_PAD + o] = w_fc[o, oc*HP*WP + ph*WP + pw]
    # Rows at odd pooled-w anchors stay zero (floor-mode 2x2 pool drops them).
    w_fc_r = w_fc.reshape(FC_OUT, OC, HP, WP)
    w_pool_fc = np.zeros(((OW - 1) * OC, HP * OUT_PAD), np.float32)
    for ph in range(HP):
        for pw in range(WP):
            w_pool_fc[(2 * pw) * OC:(2 * pw) * OC + OC,
                      ph * OUT_PAD:ph * OUT_PAD + FC_OUT] = w_fc_r[:, :, ph, pw].T

    bias_fc = np.zeros((1, OUT_PAD), np.float32)
    bias_fc[0, :FC_OUT] = b_fc

    return {
        "wb": jnp.asarray(wb),                 # (KH, W*IC, OW*OC)
        "bias_conv": jnp.asarray(bias_conv),   # (1, OW*OC)
        "w_pool_fc": jnp.asarray(w_pool_fc),   # ((OW-1)*OC, HP*OUT_PAD)
        "bias_fc": jnp.asarray(bias_fc),       # (1, OUT_PAD)
    }


# ----------------------------------------------------------------------------
# Fused kernel: conv1 + bias + ReLU + 2x2 maxpool + flatten + fc1 + ReLU.
#   x_ref     : (N*H, W*IC)            f32 VMEM
#   wb_ref    : (KH, W*IC, OW*OC)      f32 VMEM
#   bconv_ref : (1, OW*OC)             f32 VMEM
#   wfc_ref   : ((OW-1)*OC, HP*OUT_PAD) f32 VMEM
#   bfc_ref   : (1, OUT_PAD)           f32 VMEM
#   o_ref     : (N, OUT_PAD)           f32 VMEM
# ----------------------------------------------------------------------------
def _fused_net_kernel(x_ref, wb_ref, bconv_ref, wfc_ref, bfc_ref, o_ref, *,
                      n_batch, in_h, in_w):
    OH, OW = in_h - KH + 1, in_w - KW + 1
    HP = OH // 2
    rows = n_batch * in_h - (KH - 1)     # conv rows in the (n, h) row space

    # ---- conv1 as KH banded MXU matmuls -------------------------------------
    x = x_ref[...]                                         # (N*H, W*IC)
    acc = jnp.zeros((rows, OW * OC), jnp.float32)
    for kh in range(KH):                                   # static unroll (5)
        acc = acc + jnp.dot(x[kh:kh + rows, :], wb_ref[kh],
                            preferred_element_type=jnp.float32)
    z = jnp.maximum(acc + bconv_ref[...], 0.0)             # bias + ReLU

    # ---- 2x2/2 max pool, vectorized (computed at every anchor) --------------
    mh = jnp.maximum(z[:rows - 1, :], z[1:rows, :])        # pool over h
    mw = jnp.maximum(mh[:, :(OW - 1) * OC], mh[:, OC:])    # pool over w

    # ---- fc1: lane contraction on the MXU, then a tiny row gather/sum -------
    # b_mat[r, ph*OUT_PAD + o] = contribution of pooled row r to output o,
    # assuming r's pooled-h index is ph; valid rows are r = n*H + 2*ph.
    b_mat = jnp.dot(mw, wfc_ref[...], preferred_element_type=jnp.float32)
    bfc = bfc_ref[...]                                     # (1, OUT_PAD)
    for n in range(n_batch):                               # static unroll
        acc_fc = jnp.zeros((1, OUT_PAD), jnp.float32)
        for ph in range(HP):
            r = n * in_h + 2 * ph
            acc_fc = acc_fc + b_mat[r:r + 1, ph * OUT_PAD:(ph + 1) * OUT_PAD]
        # Lane-dense (128-wide) row store.
        o_ref[n, :] = jnp.maximum(acc_fc + bfc, 0.0)[0, :]


def net_forward(x_nchw, prepped):
    """Forward pass of `Net`. x_nchw: (N, 3, H, W) float32 (PyTorch layout)."""
    n, _, in_h, in_w = x_nchw.shape

    # NHWC, then fold (w, ic) into lanes and (n, h) into rows: the kernel
    # consumes a single 2-D (N*H, W*IC) slab (one cheap XLA op on the input;
    # there is no intermediate HBM round-trip between stages any more).
    x2 = jnp.transpose(x_nchw, (0, 2, 3, 1)).reshape(n * in_h, in_w * IC)

    vmem = functools.partial(pl.BlockSpec, memory_space=pltpu.MemorySpace.VMEM)
    kernel = functools.partial(_fused_net_kernel,
                               n_batch=n, in_h=in_h, in_w=in_w)

    out_pad = pl.pallas_call(
        kernel,
        out_shape=jax.ShapeDtypeStruct((n, OUT_PAD), jnp.float32),
        in_specs=[vmem(), vmem(), vmem(), vmem(), vmem()],
        out_specs=vmem(),
    )(x2, prepped["wb"], prepped["bias_conv"], prepped["w_pool_fc"],
      prepped["bias_fc"])

    return out_pad[:, :FC_OUT]


# ----------------------------------------------------------------------------
# Pure-JAX reference with identical semantics (for correctness check).
# ----------------------------------------------------------------------------
def reference_forward(x_nchw, params):
    y = jax.lax.conv_general_dilated(
        x_nchw, params["conv1_w"], window_strides=(1, 1), padding="VALID",
        dimension_numbers=("NCHW", "OIHW", "NCHW"))
    y = y + params["conv1_b"][None, :, None, None]
    y = jnp.maximum(y, 0.0)
    N, C, H, W = y.shape
    y = y.reshape(N, C, H // 2, 2, W // 2, 2).max(axis=(3, 5))
    y = y.reshape(N, -1)
    y = jnp.maximum(y @ params["fc1_w"].T + params["fc1_b"], 0.0)
    return y


def init_params(key, in_h, in_w):
    """Deterministic synthetic parameters with the module's shapes."""
    k1, k2, k3, k4 = jax.random.split(key, 4)
    hp, wp = (in_h - KH + 1) // 2, (in_w - KW + 1) // 2
    flat = OC * hp * wp  # actual flatten width (see TODO(synk) at top)
    return {
        "conv1_w": 0.1 * jax.random.normal(k1, (OC, IC, KH, KW), jnp.float32),
        "conv1_b": 0.1 * jax.random.normal(k2, (OC,), jnp.float32),
        "fc1_w":   0.05 * jax.random.normal(k3, (FC_OUT, flat), jnp.float32),
        "fc1_b":   0.05 * jax.random.normal(k4, (FC_OUT,), jnp.float32),
    }


if __name__ == "__main__":
    key = jax.random.PRNGKey(0)
    k_x, k_p = jax.random.split(key)

    # Small CIFAR-like input: batch=2, 3 channels, 16x16 spatial (NCHW).
    x = jax.random.normal(k_x, (2, 3, 16, 16), jnp.float32)
    params = init_params(k_p, 16, 16)
    prepped = prepare_params(params, 16, 16)

    out = net_forward(x, prepped)
    out = jax.block_until_ready(out)

    ref = reference_forward(x, params)
    assert out.shape == (2, 120), out.shape
    assert jnp.allclose(out, ref, rtol=1e-4, atol=1e-4), "mismatch vs reference"

    print("KERNEL_OK")
</pallas_src>

<mosaic_0001>
module attributes {stable_mosaic.version = 11 : i64} {
  func.func @_fused_net_kernel(%arg0: memref<32x48xf32, #tpu.memory_space<vmem>>, %arg1: memref<5x48x72xf32, #tpu.memory_space<vmem>>, %arg2: memref<1x72xf32, #tpu.memory_space<vmem>>, %arg3: memref<66x768xf32, #tpu.memory_space<vmem>>, %arg4: memref<1x128xf32, #tpu.memory_space<vmem>>, %arg5: memref<2x128xf32, #tpu.memory_space<vmem>>) attributes {dimension_semantics = [], scalar_prefetch = 0 : i64, scratch_operands = 0 : i64, tpu.core_type = #tpu.core_type<tc>} {
    %c0 = arith.constant 0 : index
    %c0_0 = arith.constant 0 : index
    %0 = vector.load %arg0[%c0, %c0_0] : memref<32x48xf32, #tpu.memory_space<vmem>>, vector<32x48xf32>
    %cst = arith.constant 0.000000e+00 : f32
    %1 = vector.broadcast %cst : f32 to vector<28x72xf32>
    %2 = vector.extract_strided_slice %0 {offsets = [0, 0], sizes = [28, 48], strides = [1, 1]} : vector<32x48xf32> to vector<28x48xf32>
    %c0_1 = arith.constant 0 : index
    %c0_2 = arith.constant 0 : index
    %c0_3 = arith.constant 0 : index
    %3 = vector.load %arg1[%c0_1, %c0_2, %c0_3] : memref<5x48x72xf32, #tpu.memory_space<vmem>>, vector<1x48x72xf32>
    %4 = vector.shape_cast %3 : vector<1x48x72xf32> to vector<48x72xf32>
    %cst_4 = arith.constant dense<0.000000e+00> : vector<28x72xf32>
    %5 = tpu.matmul %2, %4, %cst_4 {dimension_numbers = #tpu.dot_dimension_numbers<[1], [0], [0], [1], [0, 0, 1, 1], [], []>} : vector<28x48xf32>, vector<48x72xf32>, vector<28x72xf32> -> vector<28x72xf32>
    %6 = arith.addf %1, %5 : vector<28x72xf32>
    %7 = vector.extract_strided_slice %0 {offsets = [1, 0], sizes = [28, 48], strides = [1, 1]} : vector<32x48xf32> to vector<28x48xf32>
    %c1 = arith.constant 1 : index
    %c0_5 = arith.constant 0 : index
    %c0_6 = arith.constant 0 : index
    %8 = vector.load %arg1[%c1, %c0_5, %c0_6] : memref<5x48x72xf32, #tpu.memory_space<vmem>>, vector<1x48x72xf32>
    %9 = vector.shape_cast %8 : vector<1x48x72xf32> to vector<48x72xf32>
    %cst_7 = arith.constant dense<0.000000e+00> : vector<28x72xf32>
    %10 = tpu.matmul %7, %9, %cst_7 {dimension_numbers = #tpu.dot_dimension_numbers<[1], [0], [0], [1], [0, 0, 1, 1], [], []>} : vector<28x48xf32>, vector<48x72xf32>, vector<28x72xf32> -> vector<28x72xf32>
    %11 = arith.addf %6, %10 : vector<28x72xf32>
    %12 = vector.extract_strided_slice %0 {offsets = [2, 0], sizes = [28, 48], strides = [1, 1]} : vector<32x48xf32> to vector<28x48xf32>
    %c2 = arith.constant 2 : index
    %c0_8 = arith.constant 0 : index
    %c0_9 = arith.constant 0 : index
    %13 = vector.load %arg1[%c2, %c0_8, %c0_9] : memref<5x48x72xf32, #tpu.memory_space<vmem>>, vector<1x48x72xf32>
    %14 = vector.shape_cast %13 : vector<1x48x72xf32> to vector<48x72xf32>
    %cst_10 = arith.constant dense<0.000000e+00> : vector<28x72xf32>
    %15 = tpu.matmul %12, %14, %cst_10 {dimension_numbers = #tpu.dot_dimension_numbers<[1], [0], [0], [1], [0, 0, 1, 1], [], []>} : vector<28x48xf32>, vector<48x72xf32>, vector<28x72xf32> -> vector<28x72xf32>
    %16 = arith.addf %11, %15 : vector<28x72xf32>
    %17 = vector.extract_strided_slice %0 {offsets = [3, 0], sizes = [28, 48], strides = [1, 1]} : vector<32x48xf32> to vector<28x48xf32>
    %c3 = arith.constant 3 : index
    %c0_11 = arith.constant 0 : index
    %c0_12 = arith.constant 0 : index
    %18 = vector.load %arg1[%c3, %c0_11, %c0_12] : memref<5x48x72xf32, #tpu.memory_space<vmem>>, vector<1x48x72xf32>
    %19 = vector.shape_cast %18 : vector<1x48x72xf32> to vector<48x72xf32>
    %cst_13 = arith.constant dense<0.000000e+00> : vector<28x72xf32>
    %20 = tpu.matmul %17, %19, %cst_13 {dimension_numbers = #tpu.dot_dimension_numbers<[1], [0], [0], [1], [0, 0, 1, 1], [], []>} : vector<28x48xf32>, vector<48x72xf32>, vector<28x72xf32> -> vector<28x72xf32>
    %21 = arith.addf %16, %20 : vector<28x72xf32>
    %22 = vector.extract_strided_slice %0 {offsets = [4, 0], sizes = [28, 48], strides = [1, 1]} : vector<32x48xf32> to vector<28x48xf32>
    %c4 = arith.constant 4 : index
    %c0_14 = arith.constant 0 : index
    %c0_15 = arith.constant 0 : index
    %23 = vector.load %arg1[%c4, %c0_14, %c0_15] : memref<5x48x72xf32, #tpu.memory_space<vmem>>, vector<1x48x72xf32>
    %24 = vector.shape_cast %23 : vector<1x48x72xf32> to vector<48x72xf32>
    %cst_16 = arith.constant dense<0.000000e+00> : vector<28x72xf32>
    %25 = tpu.matmul %22, %24, %cst_16 {dimension_numbers = #tpu.dot_dimension_numbers<[1], [0], [0], [1], [0, 0, 1, 1], [], []>} : vector<28x48xf32>, vector<48x72xf32>, vector<28x72xf32> -> vector<28x72xf32>
    %26 = arith.addf %21, %25 : vector<28x72xf32>
    %c0_17 = arith.constant 0 : index
    %c0_18 = arith.constant 0 : index
    %27 = vector.load %arg2[%c0_17, %c0_18] : memref<1x72xf32, #tpu.memory_space<vmem>>, vector<1x72xf32>
    %28 = vector.broadcast %27 : vector<1x72xf32> to vector<28x72xf32>
    %29 = arith.addf %26, %28 : vector<28x72xf32>
    %cst_19 = arith.constant 0.000000e+00 : f32
    %30 = vector.broadcast %cst_19 : f32 to vector<28x72xf32>
    %31 = arith.maximumf %29, %30 : vector<28x72xf32>
    %32 = vector.extract_strided_slice %31 {offsets = [0, 0], sizes = [27, 72], strides = [1, 1]} : vector<28x72xf32> to vector<27x72xf32>
    %33 = vector.extract_strided_slice %31 {offsets = [1, 0], sizes = [27, 72], strides = [1, 1]} : vector<28x72xf32> to vector<27x72xf32>
    %34 = arith.maximumf %32, %33 : vector<27x72xf32>
    %35 = vector.extract_strided_slice %34 {offsets = [0, 0], sizes = [27, 66], strides = [1, 1]} : vector<27x72xf32> to vector<27x66xf32>
    %36 = vector.extract_strided_slice %34 {offsets = [0, 6], sizes = [27, 66], strides = [1, 1]} : vector<27x72xf32> to vector<27x66xf32>
    %37 = arith.maximumf %35, %36 : vector<27x66xf32>
    %c0_20 = arith.constant 0 : index
    %c0_21 = arith.constant 0 : index
    %38 = vector.load %arg3[%c0_20, %c0_21] : memref<66x768xf32, #tpu.memory_space<vmem>>, vector<66x768xf32>
    %cst_22 = arith.constant dense<0.000000e+00> : vector<27x768xf32>
    %39 = tpu.matmul %37, %38, %cst_22 {dimension_numbers = #tpu.dot_dimension_numbers<[1], [0], [0], [1], [0, 0, 1, 1], [], []>} : vector<27x66xf32>, vector<66x768xf32>, vector<27x768xf32> -> vector<27x768xf32>
    %c0_23 = arith.constant 0 : index
    %c0_24 = arith.constant 0 : index
    %40 = vector.load %arg4[%c0_23, %c0_24] : memref<1x128xf32, #tpu.memory_space<vmem>>, vector<1x128xf32>
    %cst_25 = arith.constant 0.000000e+00 : f32
    %41 = vector.broadcast %cst_25 : f32 to vector<1x128xf32>
    %42 = vector.extract_strided_slice %39 {offsets = [0, 0], sizes = [1, 128], strides = [1, 1]} : vector<27x768xf32> to vector<1x128xf32>
    %43 = arith.addf %41, %42 : vector<1x128xf32>
    %44 = vector.extract_strided_slice %39 {offsets = [2, 128], sizes = [1, 128], strides = [1, 1]} : vector<27x768xf32> to vector<1x128xf32>
    %45 = arith.addf %43, %44 : vector<1x128xf32>
    %46 = vector.extract_strided_slice %39 {offsets = [4, 256], sizes = [1, 128], strides = [1, 1]} : vector<27x768xf32> to vector<1x128xf32>
    %47 = arith.addf %45, %46 : vector<1x128xf32>
    %48 = vector.extract_strided_slice %39 {offsets = [6, 384], sizes = [1, 128], strides = [1, 1]} : vector<27x768xf32> to vector<1x128xf32>
    %49 = arith.addf %47, %48 : vector<1x128xf32>
    %50 = vector.extract_strided_slice %39 {offsets = [8, 512], sizes = [1, 128], strides = [1, 1]} : vector<27x768xf32> to vector<1x128xf32>
    %51 = arith.addf %49, %50 : vector<1x128xf32>
    %52 = vector.extract_strided_slice %39 {offsets = [10, 640], sizes = [1, 128], strides = [1, 1]} : vector<27x768xf32> to vector<1x128xf32>
    %53 = arith.addf %51, %52 : vector<1x128xf32>
    %54 = arith.addf %53, %40 : vector<1x128xf32>
    %cst_26 = arith.constant 0.000000e+00 : f32
    %55 = vector.broadcast %cst_26 : f32 to vector<1x128xf32>
    %56 = arith.maximumf %54, %55 : vector<1x128xf32>
    %57 = vector.shape_cast %56 : vector<1x128xf32> to vector<128xf32>
    %c0_27 = arith.constant 0 : index
    %c0_28 = arith.constant 0 : index
    %58 = vector.load %arg5[%c0_27, %c0_28] : memref<2x128xf32, #tpu.memory_space<vmem>>, vector<1x128xf32>
    %59 = vector.shape_cast %58 : vector<1x128xf32> to vector<128xf32>
    %60 = vector.shape_cast %57 : vector<128xf32> to vector<1x128xf32>
    tpu.vector_store %arg5[%c0_27, %c0_28], %60 {strides = array<i32>} : memref<2x128xf32, #tpu.memory_space<vmem>>, vector<1x128xf32>,
    %cst_29 = arith.constant 0.000000e+00 : f32
    %61 = vector.broadcast %cst_29 : f32 to vector<1x128xf32>
    %62 = vector.extract_strided_slice %39 {offsets = [16, 0], sizes = [1, 128], strides = [1, 1]} : vector<27x768xf32> to vector<1x128xf32>
    %63 = arith.addf %61, %62 : vector<1x128xf32>
    %64 = vector.extract_strided_slice %39 {offsets = [18, 128], sizes = [1, 128], strides = [1, 1]} : vector<27x768xf32> to vector<1x128xf32>
    %65 = arith.addf %63, %64 : vector<1x128xf32>
    %66 = vector.extract_strided_slice %39 {offsets = [20, 256], sizes = [1, 128], strides = [1, 1]} : vector<27x768xf32> to vector<1x128xf32>
    %67 = arith.addf %65, %66 : vector<1x128xf32>
    %68 = vector.extract_strided_slice %39 {offsets = [22, 384], sizes = [1, 128], strides = [1, 1]} : vector<27x768xf32> to vector<1x128xf32>
    %69 = arith.addf %67, %68 : vector<1x128xf32>
    %70 = vector.extract_strided_slice %39 {offsets = [24, 512], sizes = [1, 128], strides = [1, 1]} : vector<27x768xf32> to vector<1x128xf32>
    %71 = arith.addf %69, %70 : vector<1x128xf32>
    %72 = vector.extract_strided_slice %39 {offsets = [26, 640], sizes = [1, 128], strides = [1, 1]} : vector<27x768xf32> to vector<1x128xf32>
    %73 = arith.addf %71, %72 : vector<1x128xf32>
    %74 = arith.addf %73, %40 : vector<1x128xf32>
    %cst_30 = arith.constant 0.000000e+00 : f32
    %75 = vector.broadcast %cst_30 : f32 to vector<1x128xf32>
    %76 = arith.maximumf %74, %75 : vector<1x128xf32>
    %77 = vector.shape_cast %76 : vector<1x128xf32> to vector<128xf32>
    %c1_31 = arith.constant 1 : index
    %c0_32 = arith.constant 0 : index
    %78 = vector.load %arg5[%c1_31, %c0_32] : memref<2x128xf32, #tpu.memory_space<vmem>>, vector<1x128xf32>
    %79 = vector.shape_cast %78 : vector<1x128xf32> to vector<128xf32>
    %80 = vector.shape_cast %77 : vector<128xf32> to vector<1x128xf32>
    tpu.vector_store %arg5[%c1_31, %c0_32], %80 {strides = array<i32>} : memref<2x128xf32, #tpu.memory_space<vmem>>, vector<1x128xf32>,
    return
  }
}

</mosaic_0001>

<bundles_post_ra>
// kernel: tpu_custom_call.1
= control target key start
LH: loop header
LB: loop body
LE: loop exit
PB: predicated region body
PF: predicated region fallthrough
CT: control target
= control target key end

     0   :  { %10 = vsyncpa [#allocation3], 0  ;;  %s1494_s0 = inlined_call_operand.hbm [shape: f32[32,48], index: 0, kind: input, shape index: {}]   ;;  %s1495_s1 = inlined_call_operand.hbm [shape: f32[5,48,72], index: 1, kind: input, shape index: {}]   ;;  %s1496_s2 = inlined_call_operand.vmem [shape: f32[1,72], index: 2, kind: input, shape index: {}]   ;;  %s1497_s3 = inlined_call_operand.hbm [shape: f32[66,768], index: 3, kind: input, shape index: {}]   ;;  %s1498_s4 = inlined_call_operand.vmem [shape: f32[1,128], index: 4, kind: input, shape index: {}]   ;;  %s1499_s5 = inlined_call_operand.hbm [shape: f32[2,128], index: 5, kind: output, shape index: {}]  }
   0x1   :  { %11 = vsyncpa [#allocation6], 0 }
   0x2   :  { %12 = vsyncpa [#allocation4], 0  ;;  %s1343_s18 = smov [#allocation5]   ;;  %s1344_s20 = smov [#allocation2]  }
   0x3   :  { %s30_s19 = sshll.u32 %s1343_s18, 4  ;;  %s18_s21 = sshll.u32 %s1344_s20, 4  ;;  %s31_s19 = int_to_ptr.vmem [resolvable:$true] %s30_s19  ;;  %s19_s21 = int_to_ptr.vmem [resolvable:$true] %s18_s21 }
   0x4   :  { %s1265_s22 = scalar_lea.vmem %s31_s19, 3840  ;;  %p1270_p1 = scmp.lt.s32.totalorder %s31_s19, %s31_s19 }
   0x5   :  { %p1266_p0 = scmp.ne.s32.totalorder %s31_s19, %s1265_s22  ;;  %p1271_p2 = scmp.lt.s32.totalorder %s1265_s22, %s1265_s22 }
   0x7   :  { %p1272_p3 = por %p1271_p2, %p1270_p1 }
   0x9   :  { %p1273_p4 = pnand %p1272_p3, %p1266_p0 }
   0xb   :  { %1276 = shalt.err (!%p1273_p4)
}
   0xc   :  { %s1345_s23 = smov 128   ;;  %s1346_s24 = smov 8  }
   0xd   :  { %36 = dma.hbm_to_vmem [thread:$0]  %s1495_s1, 3840, %s31_s19, [#allocation6], %s1345_s23, %s1345_s23, %s1346_s24  }
   0xe   :  { %s1285_s27 = scalar_lea.vmem %s19_s21, 512  ;;  %p1290_p6 = scmp.lt.s32.totalorder %s19_s21, %s19_s21 }
   0xf   :  { %p1286_p5 = scmp.ne.s32.totalorder %s19_s21, %s1285_s27  ;;  %p1291_p7 = scmp.lt.s32.totalorder %s1285_s27, %s1285_s27 }
  0x11   :  { %p1292_p8 = por %p1291_p7, %p1290_p6 }
  0x13   :  { %p1293_p9 = pnand %p1292_p8, %p1286_p5 }
  0x15   :  { %1296 = shalt.err (!%p1293_p9)
}
  0x16   :  { %24 = dma.hbm_to_vmem [thread:$0]  %s1494_s0, 512, %s19_s21, [#allocation3], %s1345_s23, %s1345_s23, %s1346_s24  }
  0x17   :  { %s1347_s30 = smov [#allocation7]  }
  0x18   :  { %s44_s6 = sshll.u32 %s1347_s30, 4  ;;  %s45_s6 = int_to_ptr.vmem [resolvable:$true] %s44_s6 }
  0x19   :  { %s1305_s7 = scalar_lea.vmem %s45_s6, 6912  ;;  %p1310_p11 = scmp.lt.s32.totalorder %s45_s6, %s45_s6 }
  0x1a   :  { %p1306_p10 = scmp.ne.s32.totalorder %s45_s6, %s1305_s7  ;;  %p1311_p12 = scmp.lt.s32.totalorder %s1305_s7, %s1305_s7 }
  0x1c   :  { %p1312_p13 = por %p1311_p12, %p1310_p11 }
  0x1e   :  { %p1313_p0 = pnand %p1312_p13, %p1306_p10 }
  0x20   :  { %1316 = shalt.err (!%p1313_p0)
}
  0x21   :  { %s1348_s1 = smov 768   ;;  %s1349_s8 = smov 48  }
  0x22   :  { %50 = dma.hbm_to_vmem [thread:$0]  %s1497_s3, 6912, %s45_s6, [#allocation6], %s1348_s1, %s1348_s1, %s1349_s8  }
  0x23   :  { %1337 = dma.done.wait [#allocation3], 512  }
  0x24   :  { %1338 = vsyncadd [#allocation3], 4294966784 }
  0x25   :  { %1339 = dma.done.wait [#allocation6], 10752  }
  0x26   :  { %1340 = vsyncadd [#allocation6], 4294956544  ;;  %v78_v0 = vld [vmem:[#allocation5 + $0x58] sm:$0xff]  ;;  %v71_v1 = vld [vmem:[#allocation5 + $0x28] sm:$0xff]  ;;  %vm83_vm0 = vcmask 1046528   ;;  %vm91_vm1 = vcmask 392192  }
  0x27   :  { %v77_v2 = vld [vmem:[#allocation5 + $0x50] sm:$0xff]  ;;  %1157 = vmatprep.subr.mxu0 %v78_v0  ;;  %1175 = vmatprep.subr.mxu1 %v71_v1  ;;  %v70_v3 = vld [vmem:[#allocation5 + $0x20] sm:$0xff]  ;;  %v76_v4 = vld [vmem:[#allocation5 + $0x48] sm:$0xff]  ;;  %vm285_vm2 = vcmask 1045504   ;;  %vm397_vm3 = vcmask 1044480   ;;  %vm509_vm4 = vcmask 1043456  }
  0x28   :  { %1158 = vmatpush3.msra.mxu0 %v78_v0  ;;  %1176 = vmatpush3.msra.mxu1 %v71_v1  ;;  %v69_v5 = vld [vmem:[#allocation5 + $0x18] sm:$0xff]  ;;  %v75_v6 = vld [vmem:[#allocation5 + $0x40] sm:$0xff]  ;;  %v68_v7 = vld [vmem:[#allocation5 + $0x10] sm:$0xff]  ;;  %vm735_vm5 = vcmask 1041408   ;;  %vm722_vm6 = vcmask 539648   ;;  %s1352_s13 = smov [#allocation8]  }
  0x29   :  { %1159 = vmatprep.subr.mxu0 %v77_v2  ;;  %1177 = vmatprep.subr.mxu1 %v70_v3  ;;  %v1392_v8 = vld [vmem:[#allocation2] sm:$0xff]  ;;  %v1394_v9 = vld [vmem:[#allocation2 + $0x8] sm:$0xff]  ;;  %v1396_v10 = vld [vmem:[#allocation2 + $0x10] sm:$0xff]  ;;  %s1058_s14 = sshll.u32 %s1352_s13, 4  ;;  %s1059_s14 = int_to_ptr.vmem [resolvable:$true] %s1058_s14 }
  0x2a   :  { %1160 = vmatpush3.msra.mxu0 %v77_v2  ;;  %1178 = vmatpush3.msra.mxu1 %v70_v3  ;;  %v84_v11 = vrot.slane %v1392_v8, 1  ;;  %v85_v12 = vrot.slane %v1394_v9, 1  ;;  %v74_v13 = vld [vmem:[#allocation5 + $0x38] sm:$0xff]  ;;  %v67_v14 = vld [vmem:[#allocation5 + $0x8] sm:$0xff]  ;;  %v87_v15 = vrot.slane %v1396_v10, 1  ;;  %v73_v16 = vld [vmem:[#allocation5 + $0x30] sm:$0xff]  ;;  %p1322_p2 = scmp.lt.s32.totalorder %s1059_s14, %s1059_s14 }
  0x2b   :  { %1161 = vmatprep.subr.mxu0 %v76_v4  ;;  %1179 = vmatprep.subr.mxu1 %v69_v5  ;;  %v66_v17 = vld [vmem:[#allocation5] sm:$0xff]  ;;  %v1402_v19 = vld [vmem:[#allocation2 + $0x18] sm:$0xff]  ;;  %v284_v21 = vld [vmem:[#allocation5 + $0x88] sm:$0xff]  ;;  %v286_v30 = vrot.slane %v1392_v8, 2  ;;  %v287_v31 = vrot.slane %v1394_v9, 2  ;;  %v289_v34 = vrot.slane %v1396_v10, 2 }
  0x2c   :  { %1162 = vmatpush3.msra.mxu0 %v76_v4  ;;  %1180 = vmatpush3.msra.mxu1 %v69_v5  ;;  %v86_v18 = vsel %vm83_vm0, %v84_v11, %v85_v12  ;;  %v88_v20 = vsel %vm83_vm0, %v85_v12, %v87_v15  ;;  %v396_v22 = vld [vmem:[#allocation5 + $0xb8] sm:$0xff]  ;;  %v89_v23 = vrot.slane %v1402_v19, 1  ;;  %v283_v24 = vld [vmem:[#allocation5 + $0x80] sm:$0xff]  ;;  %v395_v25 = vld [vmem:[#allocation5 + $0xb0] sm:$0xff]  ;;  %v398_v37 = vrot.slane %v1392_v8, 3 }
  0x2d   :  { %1163 = vmatprep.subr.mxu0 %v75_v6  ;;  %1181 = vmatprep.subr.mxu1 %v68_v7  ;;  %v282_v26 = vld [vmem:[#allocation5 + $0x78] sm:$0xff]  ;;  %v281_v28 = vld [vmem:[#allocation5 + $0x70] sm:$0xff]  ;;  %v394_v29 = vld [vmem:[#allocation5 + $0xa8] sm:$0xff]  ;;  %v399_v38 = vrot.slane %v1394_v9, 3  ;;  %v288_v39 = vsel %vm285_vm2, %v286_v30, %v287_v31  ;;  %v401_v40 = vrot.slane %v1396_v10, 3  ;;  %v290_v41 = vsel %vm285_vm2, %v287_v31, %v289_v34 }
  0x2e   :  { %1164 = vmatpush3.msra.mxu0 %v75_v6  ;;  %1182 = vmatpush3.msra.mxu1 %v68_v7  ;;  %v90_v27 = vsel %vm83_vm0, %v87_v15, %v89_v23  ;;  %v280_v32 = vld [vmem:[#allocation5 + $0x68] sm:$0xff]  ;;  %v393_v33 = vld [vmem:[#allocation5 + $0xa0] sm:$0xff]  ;;  %v392_v36 = vld [vmem:[#allocation5 + $0x98] sm:$0xff]  ;;  %v291_v42 = vrot.slane %v1402_v19, 2  ;;  %v403_v45 = vrot.slane %v1402_v19, 3  ;;  %v510_v50 = vrot.slane %v1392_v8, 4 }
  0x2f   :  { %1165 = vmatprep.subr.mxu0 %v74_v13  ;;  %1183 = vmatprep.subr.mxu1 %v67_v14  ;;  %v279_v35 = vld [vmem:[#allocation5 + $0x60] sm:$0xff]  ;;  %v391_v43 = vld [vmem:[#allocation5 + $0x90] sm:$0xff]  ;;  %v508_v44 = vld [vmem:[#allocation5 + $0xe8] sm:$0xff]  ;;  %v400_v46 = vsel %vm397_vm3, %v398_v37, %v399_v38  ;;  %v402_v47 = vsel %vm397_vm3, %v399_v38, %v401_v40  ;;  %v511_v51 = vrot.slane %v1394_v9, 4  ;;  %v513_v57 = vrot.slane %v1396_v10, 4 }
  0x30   :  { %1166 = vmatpush3.msra.mxu0 %v74_v13  ;;  %1184 = vmatpush3.msra.mxu1 %v67_v14  ;;  %v507_v48 = vld [vmem:[#allocation5 + $0xe0] sm:$0xff]  ;;  %v292_v49 = vsel %vm285_vm2, %v289_v34, %v291_v42  ;;  %v404_v52 = vsel %vm397_vm3, %v401_v40, %v403_v45  ;;  %v506_v53 = vld [vmem:[#allocation5 + $0xd8] sm:$0xff]  ;;  %v505_v54 = vld [vmem:[#allocation5 + $0xd0] sm:$0xff]  ;;  %v515_v58 = vrot.slane %v1402_v19, 4 }
  0x31   :  { %1167 = vmatprep.subr.mxu0 %v73_v16  ;;  %1185 = vmatprep.subr.mxu1 %v66_v17  ;;  %v512_v55 = vsel %vm509_vm4, %v510_v50, %v511_v51  ;;  %v504_v56 = vld [vmem:[#allocation5 + $0xc8] sm:$0xff]  ;;  %v503_v59 = vld [vmem:[#allocation5 + $0xc0] sm:$0xff]  ;;  %v514_v60 = vsel %vm509_vm4, %v511_v51, %v513_v57  ;;  %v717_v62 = vld [vmem:[#allocation7 + $0x188] sm:$0x3] }
  0x32   :  { %1168 = vmatpush3.msra.mxu0 %v73_v16  ;;  %1169 = vmatprep.mubr.msk.f32.mxu0 %vm91_vm1, %v86_v18  ;;  %v516_v61 = vsel %vm509_vm4, %v513_v57, %v515_v58  ;;  %v716_v63 = vld [vmem:[#allocation7 + $0x180] sm:$0x3]  ;;  %v711_v0 = vld [vmem:[#allocation7 + $0x158] sm:$0xff]  ;;  %v718_v2 = vld [vmem:[#allocation7 + $0x190] sm:$0x3] }
  0x33   :  { %1186 = vmatpush3.msra.mxu1 %v66_v17  ;;  %1187 = vmatprep.mubr.msk.f32.mxu1 %vm91_vm1, %v1392_v8  ;;  %v719_v1 = vld [vmem:[#allocation7 + $0x198] sm:$0x3]  ;;  %v710_v3 = vld [vmem:[#allocation7 + $0x150] sm:$0xff]  ;;  %v713_v4 = vld [vmem:[#allocation7 + $0x168] sm:$0xff] }
  0x34   :  { %1170 = vmatmul.mubr.msk.f32.vlgmr.msra.gmra.mxu0 %vm91_vm1, %v88_v20  ;;  %1188 = vmatmul.mubr.msk.f32.vlgmr.msra.gmra.mxu1 %vm91_vm1, %v1394_v9  ;;  %v705_v5 = vld [vmem:[#allocation7 + $0x128] sm:$0xff]  ;;  %v712_v6 = vld [vmem:[#allocation7 + $0x160] sm:$0xff]  ;;  %v707_v8 = vld [vmem:[#allocation7 + $0x138] sm:$0xff] }
  0x35   :  { %1193 = vmatprep.subr.mxu0 %v284_v21  ;;  %1211 = vmatprep.subr.mxu1 %v396_v22  ;;  %v704_v7 = vld [vmem:[#allocation7 + $0x120] sm:$0xff]  ;;  %v699_v9 = vld [vmem:[#allocation7 + $0xf8] sm:$0xff]  ;;  %v698_v11 = vld [vmem:[#allocation7 + $0xf0] sm:$0xff] }
  0x36   :  { %1194 = vmatpush3.msra.mxu0 %v284_v21  ;;  %1212 = vmatpush3.msra.mxu1 %v396_v22  ;;  %v701_v12 = vld [vmem:[#allocation7 + $0x108] sm:$0xff]  ;;  %v700_v14 = vld [vmem:[#allocation7 + $0x100] sm:$0xff]  ;;  %v695_v16 = vld [vmem:[#allocation7 + $0xd8] sm:$0xff] }
  0x37   :  { %1195 = vmatprep.subr.mxu0 %v283_v24  ;;  %1213 = vmatprep.subr.mxu1 %v395_v25  ;;  %v693_v13 = vld [vmem:[#allocation7 + $0xc8] sm:$0xff]  ;;  %v692_v15 = vld [vmem:[#allocation7 + $0xc0] sm:$0xff]  ;;  %v687_v17 = vld [vmem:[#allocation7 + $0x98] sm:$0xff] }
  0x38   :  { %1196 = vmatpush3.msra.mxu0 %v283_v24  ;;  %1214 = vmatpush3.msra.mxu1 %v395_v25  ;;  %v694_v18 = vld [vmem:[#allocation7 + $0xd0] sm:$0xff]  ;;  %v689_v20 = vld [vmem:[#allocation7 + $0xa8] sm:$0xff]  ;;  %v688_v22 = vld [vmem:[#allocation7 + $0xa0] sm:$0xff] }
  0x39   :  { %1197 = vmatprep.subr.mxu0 %v282_v26  ;;  %1172 = vmatprep.mubr.msk.f32.mxu0 %vm91_vm1, %v90_v27  ;;  %v681_v21 = vld [vmem:[#allocation7 + $0x68] sm:$0xff]  ;;  %v683_v24 = vld [vmem:[#allocation7 + $0x78] sm:$0xff]  ;;  %v674_v27 = vld [vmem:[#allocation7 + $0x30] sm:$0xff] }
  0x3a   :  { %1198 = vmatpush3.msra.mxu0 %v282_v26  ;;  %1190 = vmatprep.mubr.msk.f32.mxu1 %vm91_vm1, %v1396_v10  ;;  %v706_v10 = vld [vmem:[#allocation7 + $0x130] sm:$0xff]  ;;  %v675_v25 = vld [vmem:[#allocation7 + $0x38] sm:$0xff]  ;;  %v676_v30 = vld [vmem:[#allocation7 + $0x40] sm:$0xff] }
  0x3b   :  { %1199 = vmatprep.subr.mxu0 %v281_v28  ;;  %1215 = vmatprep.subr.mxu1 %v394_v29  ;;  %v682_v26 = vld [vmem:[#allocation7 + $0x70] sm:$0xff]  ;;  %v671_v57 = vld [vmem:[#allocation7 + $0x18] sm:$0xff] }
  0x3c   :  { %1173 = vmatmul.mubr.msk.f32.gmra.mxu0 %vm91_vm1, %v89_v23  ;;  %1191 = vmatmul.mubr.msk.f32.gmra.mxu1 %vm91_vm1, %v1402_v19  ;;  %v686_v19 = vld [vmem:[#allocation7 + $0x90] sm:$0xff]  ;;  %v680_v23 = vld [vmem:[#allocation7 + $0x60] sm:$0xff] }
  0x3d   :  { %1200 = vmatpush3.msra.mxu0 %v281_v28  ;;  %1216 = vmatpush3.msra.mxu1 %v394_v29  ;;  %v677_v28 = vld [vmem:[#allocation7 + $0x48] sm:$0xff] }
  0x3e   :  { %1201 = vmatprep.subr.mxu0 %v280_v32  ;;  %1217 = vmatprep.subr.mxu1 %v393_v33  ;;  %v669_v29 = vld [vmem:[#allocation7 + $0x8] sm:$0xff] }
  0x3f   :  { %1202 = vmatpush3.msra.mxu0 %v280_v32  ;;  %1218 = vmatpush3.msra.mxu1 %v393_v33 }
  0x40   :  { %1203 = vmatprep.subr.mxu0 %v279_v35  ;;  %1219 = vmatprep.subr.mxu1 %v392_v36 }
  0x41   :  { %1204 = vmatpush3.msra.mxu0 %v279_v35  ;;  %1205 = vmatprep.mubr.msk.f32.mxu0 %vm91_vm1, %v288_v39 }
  0x42   :  { %1220 = vmatpush3.msra.mxu1 %v392_v36  ;;  %1206 = vmatmul.mubr.msk.f32.vlgmr.msra.gmra.mxu0 %vm91_vm1, %v290_v41 }
  0x43   :  { %1221 = vmatprep.subr.mxu1 %v391_v43  ;;  %1229 = vmatprep.subr.mxu0 %v508_v44 }
  0x44   :  { %1222 = vmatpush3.msra.mxu1 %v391_v43  ;;  %1223 = vmatprep.mubr.msk.f32.mxu1 %vm91_vm1, %v400_v46 }
  0x45   :  { %1230 = vmatpush3.msra.mxu0 %v508_v44  ;;  %1224 = vmatmul.mubr.msk.f32.vlgmr.msra.gmra.mxu1 %vm91_vm1, %v402_v47 }
  0x46   :  { %1231 = vmatprep.subr.mxu0 %v507_v48  ;;  %1208 = vmatprep.mubr.msk.f32.mxu0 %vm91_vm1, %v292_v49 }
  0x47   :  { %1232 = vmatpush3.msra.mxu0 %v507_v48  ;;  %1226 = vmatprep.mubr.msk.f32.mxu1 %vm91_vm1, %v404_v52 }
  0x48   :  { %1209 = vmatmul.mubr.msk.f32.gmra.mxu0 %vm91_vm1, %v291_v42  ;;  %1233 = vmatprep.subr.mxu0 %v506_v53 }
  0x49   :  { %1234 = vmatpush3.msra.mxu0 %v506_v53  ;;  %1227 = vmatmul.mubr.msk.f32.gmra.mxu1 %vm91_vm1, %v403_v45 }
  0x4a   :  { %1235 = vmatprep.subr.mxu0 %v505_v54  ;;  %1241 = vmatprep.mubr.msk.f32.mxu0 %vm91_vm1, %v512_v55  ;;  %v1088_v55 = vld [vmem:[%s1496_s2] ss:$0 sm:$0xff]  ;;  %s1351_s2 = smov 122  }
  0x4b   :  { %1236 = vmatpush3.msra.mxu0 %v505_v54  ;;  %1089 = vmatprep.subr.msk.mxu1 %vm735_vm5, %v717_v62  ;;  %v721_v62 = vld [vmem:[#allocation7 + $0x1a8] sm:$0x3] }
  0x4c   :  { %1237 = vmatprep.subr.mxu0 %v504_v56  ;;  %1090 = vmatpush1.msk.msra.mxu1 %vm735_vm5, %v716_v63 }
  0x4d   :  { %1238 = vmatpush3.msra.mxu0 %v504_v56  ;;  %770 = vmatprep.subr.mxu1 %v711_v0  ;;  %v668_v56 = vld [vmem:[#allocation7] sm:$0xff] }
  0x4e   :  { %1239 = vmatprep.subr.mxu0 %v503_v59  ;;  %771 = vmatpush1.msra.mxu1 %v710_v3 }
  0x4f   :  { %1240 = vmatpush3.msra.mxu0 %v503_v59  ;;  %772 = vmatprep.subr.mxu1 %v705_v5 }
  0x50   :  { %1242 = vmatmul.mubr.msk.f32.vlgmr.msra.gmra.mxu0 %vm91_vm1, %v514_v60  ;;  %1095 = vmatprep.subr.msk.mxu0 %vm735_vm5, %v719_v1  ;;  %v1350_v1 = vmov 0.0  }
  0x51   :  { %1244 = vmatprep.mubr.msk.f32.mxu0 %vm91_vm1, %v516_v61  ;;  %1096 = vmatpush1.msk.msra.mxu0 %vm735_vm5, %v718_v2  ;;  %v670_v61 = vld [vmem:[#allocation7 + $0x10] sm:$0xff] }
  0x52   :  { %855 = vmatprep.subr.mxu0 %v713_v4  ;;  %773 = vmatpush1.msra.mxu1 %v704_v7 }
  0x53   :  { %856 = vmatpush1.msra.mxu0 %v712_v6  ;;  %774 = vmatprep.subr.mxu1 %v699_v9 }
  0x54   :  { %1245 = vmatmul.mubr.msk.f32.gmra.mxu0 %vm91_vm1, %v515_v58  ;;  %857 = vmatprep.subr.mxu0 %v707_v8 }
  0x55   :  { %858 = vmatpush1.msra.mxu0 %v706_v10  ;;  %775 = vmatpush1.msra.mxu1 %v698_v11 }
  0x56   :  { %859 = vmatprep.subr.mxu0 %v701_v12  ;;  %776 = vmatprep.subr.mxu1 %v693_v13 }
  0x57   :  { %860 = vmatpush1.msra.mxu0 %v700_v14  ;;  %777 = vmatpush1.msra.mxu1 %v692_v15 }
  0x58   :  { %861 = vmatprep.subr.mxu0 %v695_v16  ;;  %778 = vmatprep.subr.mxu1 %v687_v17 }
  0x59   :  { %862 = vmatpush1.msra.mxu0 %v694_v18  ;;  %779 = vmatpush1.msra.mxu1 %v686_v19 }
  0x5a   :  { %863 = vmatprep.subr.mxu0 %v689_v20  ;;  %780 = vmatprep.subr.mxu1 %v681_v21 }
  0x5b   :  { %864 = vmatpush1.msra.mxu0 %v688_v22  ;;  %781 = vmatpush1.msra.mxu1 %v680_v23 }
  0x5c   :  { %865 = vmatprep.subr.mxu0 %v683_v24  ;;  %782 = vmatprep.subr.mxu1 %v675_v25 }
  0x5d   :  { %866 = vmatpush1.msra.mxu0 %v682_v26  ;;  %783 = vmatpush1.msra.mxu1 %v674_v27 }
  0x5e   :  { %867 = vmatprep.subr.mxu0 %v677_v28  ;;  %784 = vmatprep.subr.mxu1 %v669_v29 }
  0x5f   :  { %868 = vmatpush1.msra.mxu0 %v676_v30  ;;  %785 = vmatpush1.msra.mxu1 %v668_v56  ;;  %v720_v30 = vld [vmem:[#allocation7 + $0x1a0] sm:$0x3] }
  0x60   :  { %869 = vmatprep.subr.mxu0 %v671_v57  ;;  %818 = vmatprep.mubr.f32.mxu1 %v1350_v1 }
  0x61   :  { %870 = vmatpush1.msra.mxu0 %v670_v61  ;;  %903 = vmatprep.mubr.f32.mxu0 %v1350_v1 }
  0x62   :  { %1101 = vmatprep.subr.msk.mxu1 %vm735_vm5, %v721_v62 }
  0xf4   :  { %v1171_v31 = vpop.f32.mrf.mxu0  ;;  %v1189_v32 = vpop.f32.mrf.mxu1 }
  0xf5   :  { %v265_v42 = vadd.f32 %v1189_v32, %v1171_v31  ;;  %v715_v31 = vld [vmem:[#allocation7 + $0x178] sm:$0xff]  ;;  %v714_v32 = vld [vmem:[#allocation7 + $0x170] sm:$0xff] }
  0xf6   :  { %v166_v33 = vpop.f32.mrf.mxu0  ;;  %v259_v35 = vpop.f32.mrf.mxu1 }
  0xf7   :  { %v260_v45 = vadd.f32 %v259_v35, %v166_v33  ;;  %v709_v35 = vld [vmem:[#allocation7 + $0x148] sm:$0xff] }
  0xfc   :  { %v1174_v34 = vpop.f32.mrf.mxu0  ;;  %v1192_v37 = vpop.f32.mrf.mxu1 }
  0xfd   :  { %v275_v47 = vadd.f32 %v1192_v37, %v1174_v34  ;;  %v708_v37 = vld [vmem:[#allocation7 + $0x140] sm:$0xff] }
  0xfe   :  { %v176_v36 = vpop.f32.mrf.mxu0  ;;  %v269_v39 = vpop.f32.mrf.mxu1 }
  0xff   :  { %v270_v51 = vadd.f32 %v269_v39, %v176_v36  ;;  %v702_v39 = vld [vmem:[#allocation7 + $0x110] sm:$0xff] }
 0x102   :  { %v1207_v38 = vpop.f32.mrf.mxu0 }
 0x103   :  { %v387_v46 = vadd.f32 %v1207_v38, %v265_v42  ;;  %v703_v38 = vld [vmem:[#allocation7 + $0x118] sm:$0xff]  ;;  %v696_v42 = vld [vmem:[#allocation7 + $0xe0] sm:$0xff] }
 0x104   :  { %v367_v40 = vpop.f32.mrf.mxu0 }
 0x105   :  { %v1225_v41 = vpop.f32.mrf.mxu1  ;;  %v386_v48 = vadd.f32 %v367_v40, %v260_v45  ;;  %v697_v40 = vld [vmem:[#allocation7 + $0xe8] sm:$0xff]  ;;  %v690_v45 = vld [vmem:[#allocation7 + $0xb0] sm:$0xff] }
 0x106   :  { %v499_v52 = vadd.f32 %v1225_v41, %v387_v46  ;;  %v685_v46 = vld [vmem:[#allocation7 + $0x88] sm:$0xff] }
 0x107   :  { %v479_v44 = vpop.f32.mrf.mxu1 }
 0x108   :  { %v1210_v43 = vpop.f32.mrf.mxu0  ;;  %v498_v58 = vadd.f32 %v479_v44, %v386_v48  ;;  %v691_v44 = vld [vmem:[#allocation7 + $0xb8] sm:$0xff]  ;;  %v684_v48 = vld [vmem:[#allocation7 + $0x80] sm:$0xff] }
 0x109   :  { %v1228_v50 = vpop.f32.mrf.mxu1  ;;  %v389_v53 = vadd.f32 %v1210_v43, %v275_v47 }
 0x10a   :  { %v377_v49 = vpop.f32.mrf.mxu0 }
 0x10b   :  { %v388_v59 = vadd.f32 %v377_v49, %v270_v51  ;;  %v489_v63 = vpop.f32.mrf.mxu1  ;;  %v501_v2 = vadd.f32 %v1228_v50, %v389_v53  ;;  %v679_v49 = vld [vmem:[#allocation7 + $0x58] sm:$0xff]  ;;  %v678_v50 = vld [vmem:[#allocation7 + $0x50] sm:$0xff]  ;;  %v673_v51 = vld [vmem:[#allocation7 + $0x28] sm:$0xff] }
 0x10d   :  { %v500_v6 = vadd.f32 %v489_v63, %v388_v59 }
 0x110   :  { %v1243_v54 = vpop.f32.mrf.mxu0 }
 0x111   :  { %v611_v60 = vadd.f32 %v1243_v54, %v499_v52  ;;  %v672_v52 = vld [vmem:[#allocation7 + $0x20] sm:$0xff] }
 0x112   :  { %v591_v0 = vpop.f32.mrf.mxu0 }
 0x113   :  { %v622_v3 = vadd.f32 %v1088_v55, %v611_v60  ;;  %v610_v4 = vadd.f32 %v591_v0, %v498_v58 }
 0x114   :  { %v1246_v5 = vpop.f32.mrf.mxu0 }
 0x115   :  { %v626_v7 = vmax.f32 %v622_v3, 0.0  ;;  %v621_v8 = vadd.f32 %v1088_v55, %v610_v4  ;;  %v613_v9 = vadd.f32 %v1246_v5, %v501_v2 }
 0x116   :  { %v601_v10 = vpop.f32.mrf.mxu0 }
 0x117   :  { %v625_v11 = vmax.f32 %v621_v8, 0.0  ;;  %v624_v12 = vadd.f32 %v1088_v55, %v613_v9  ;;  %v612_v13 = vadd.f32 %v601_v10, %v500_v6  ;;  %v634_v14 = vrot.slane %v626_v7, 1 }
 0x119   :  { %v633_v15 = vrot.slane %v625_v11, 1  ;;  %v628_v16 = vmax.f32 %v624_v12, 0.0  ;;  %v623_v17 = vadd.f32 %v1088_v55, %v612_v13 }
 0x11b   :  { %v627_v18 = vmax.f32 %v623_v17, 0.0  ;;  %v635_v19 = vsel %vm83_vm0, %v633_v15, %v634_v14  ;;  %v638_v21 = vrot.slane %v628_v16, 1 }
 0x11c   :  { %v644_v20 = vmax.f32 %v625_v11, %v635_v19 }
 0x11d   :  { %v636_v22 = vrot.slane %v627_v18, 1  ;;  %v647_v27 = vmax.f32 %v628_v16, %v638_v21 }
 0x11e   :  { %652 = vrot.lane.b32.xlu0 %v644_v20, %s1351_s2 }
 0x11f   :  { %v639_v23 = vsel %vm83_vm0, %v636_v22, %v638_v21  ;;  %v637_v24 = vsel %vm83_vm0, %v634_v14, %v636_v22 }
 0x120   :  { %v646_v25 = vmax.f32 %v627_v18, %v639_v23  ;;  %v645_v26 = vmax.f32 %v626_v7, %v637_v24 }
 0x122   :  { %656 = vrot.lane.b32.xlu1 %v646_v25, %s1351_s2  ;;  %654 = vrot.lane.b32.xlu0 %v645_v26, %s1351_s2 }
 0x126   :  { %658 = vrot.lane.b32.xlu1 %v647_v27, %s1351_s2 }
 0x190   :  { %v653_v28 = vpop.permute.xlu0 %652 }
 0x191   :  { %v664_v29 = vmax.f32 %v644_v20, %v653_v28  ;;  %v1009_v20 = vld [vmem:[%s1498_s4] sm:$0x1]  ;;  %s1317_s4 = scalar_lea.vmem %s1059_s14, 32 }
 0x192   :  { %p1318_p1 = scmp.ne.s32.totalorder %s1059_s14, %s1317_s4  ;;  %p1323_p3 = scmp.lt.s32.totalorder %s1317_s4, %s1317_s4 }
 0x193   :  { %1091 = vmatmul.mubr.msk.f32.vlgmr.msra.gmra.mxu1 %vm722_vm6, %v664_v29  ;;  %1097 = vmatmul.mubr.msk.f32.vlgmr.msra.gmra.mxu0 %vm722_vm6, %v664_v29 }
 0x194   :  { %1102 = vmatpush1.msk.msra.mxu1 %vm735_vm5, %v720_v30  ;;  %v657_v33 = vpop.permute.xlu1 %656  ;;  %v655_v34 = vpop.permute.xlu0 %654  ;;  %824 = vmatprep.mubr.f32.mxu1 %v1350_v1  ;;  %p1324_p4 = por %p1323_p3, %p1322_p2 }
 0x195   :  { %940 = vmatprep.subr.mxu1 %v715_v31  ;;  %v665_v36 = vmax.f32 %v645_v26, %v655_v34  ;;  %909 = vmatprep.mubr.f32.mxu0 %v1350_v1  ;;  %v666_v41 = vmax.f32 %v646_v25, %v657_v33 }
 0x196   :  { %941 = vmatpush1.msra.mxu1 %v714_v32  ;;  %p1325_p5 = pnand %p1324_p4, %p1318_p1 }
 0x197   :  { %942 = vmatprep.subr.mxu1 %v709_v35  ;;  %1092 = vmatmul.mubr.msk.f32.gmra.mxu1 %vm722_vm6, %v665_v36 }
 0x198   :  { %1098 = vmatmul.mubr.msk.f32.gmra.mxu0 %vm722_vm6, %v665_v36  ;;  %943 = vmatpush1.msra.mxu1 %v708_v37  ;;  %v659_v43 = vpop.permute.xlu1 %658 }
 0x199   :  { %944 = vmatprep.subr.mxu1 %v703_v38  ;;  %828 = vmatprep.mubr.f32.mxu1 %v1350_v1  ;;  %v667_v47 = vmax.f32 %v647_v27, %v659_v43 }
 0x19a   :  { %945 = vmatpush1.msra.mxu1 %v702_v39  ;;  %913 = vmatprep.mubr.f32.mxu0 %v1350_v1 }
 0x19b   :  { %946 = vmatprep.subr.mxu1 %v697_v40  ;;  %1093 = vmatmul.mubr.msk.f32.gmra.mxu1 %vm722_vm6, %v666_v41 }
 0x19c   :  { %1099 = vmatmul.mubr.msk.f32.gmra.mxu0 %vm722_vm6, %v666_v41  ;;  %947 = vmatpush1.msra.mxu1 %v696_v42 }
 0x19d   :  { %948 = vmatprep.subr.mxu1 %v691_v44  ;;  %834 = vmatprep.mubr.f32.mxu1 %v1350_v1 }
 0x19e   :  { %949 = vmatpush1.msra.mxu1 %v690_v45  ;;  %919 = vmatprep.mubr.f32.mxu0 %v1350_v1 }
 0x19f   :  { %950 = vmatprep.subr.mxu1 %v685_v46  ;;  %1094 = vmatmul.mubr.msk.f32.gmra.mxu1 %vm722_vm6, %v667_v47 }
 0x1a0   :  { %1100 = vmatmul.mubr.msk.f32.gmra.mxu0 %vm722_vm6, %v667_v47  ;;  %951 = vmatpush1.msra.mxu1 %v684_v48 }
 0x1a1   :  { %952 = vmatprep.subr.mxu1 %v679_v49  ;;  %988 = vmatprep.mubr.f32.mxu1 %v1350_v1 }
 0x1a2   :  { %953 = vmatpush1.msra.mxu1 %v678_v50 }
 0x1a3   :  { %954 = vmatprep.subr.mxu1 %v673_v51 }
 0x1a4   :  { %955 = vmatpush1.msra.mxu1 %v672_v52 }
 0x1a5   :  { %1103 = vmatmul.mubr.msk.f32.vlgmr.msra.gmra.mxu1 %vm722_vm6, %v664_v29 }
 0x1a6   :  { %992 = vmatprep.mubr.f32.mxu1 %v1350_v1 }
 0x1a9   :  { %1104 = vmatmul.mubr.msk.f32.gmra.mxu1 %vm722_vm6, %v665_v36 }
 0x1aa   :  { %998 = vmatprep.mubr.f32.mxu1 %v1350_v1 }
 0x1ad   :  { %1105 = vmatmul.mubr.msk.f32.gmra.mxu1 %vm722_vm6, %v666_v41 }
 0x1ae   :  { %1002 = vmatprep.mubr.f32.mxu1 %v1350_v1 }
 0x1b1   :  { %1106 = vmatmul.mubr.msk.f32.gmra.mxu1 %vm722_vm6, %v667_v47 }
 0x253   :  { %v820_v53 = vpop.f32.mrf.mxu1  ;;  %v905_v54 = vpop.f32.mrf.mxu0 }
 0x254   :  { %v1016_v7 = vrot.slane %v905_v54, 4 }
 0x255   :  { %v822_v55 = vpop.f32.mrf.mxu1  ;;  %v907_v56 = vpop.f32.mrf.mxu0 }
 0x256   :  { %v1012_v0 = vrot.slane %v822_v55, 2  ;;  %v1020_v12 = vrot.slane %v907_v56, 6 }
 0x257   :  { %v826_v57 = vpop.f32.mrf.mxu1 }
 0x258   :  { %v911_v58 = vpop.f32.mrf.mxu0  ;;  %v1014_v6 = vadd.f32 %v1012_v0, %v820_v53 }
 0x259   :  { %v827_v59 = vpop.f32.mrf.mxu1 }
 0x25a   :  { %v912_v60 = vpop.f32.mrf.mxu0  ;;  %v1018_v10 = vadd.f32 %v1016_v7, %v1014_v6 }
 0x25b   :  { %v830_v61 = vpop.f32.mrf.mxu1 }
 0x25c   :  { %v915_v62 = vpop.f32.mrf.mxu0  ;;  %v1022_v15 = vadd.f32 %v1020_v12, %v1018_v10 }
 0x25d   :  { %v832_v63 = vpop.f32.mrf.mxu1  ;;  %v1037_v17 = vrot.slane %v915_v62, 4 }
 0x25e   :  { %v917_v2 = vpop.f32.mrf.mxu0  ;;  %v1033_v9 = vrot.slane %v832_v63, 2 }
 0x25f   :  { %v836_v3 = vpop.f32.mrf.mxu1  ;;  %v1041_v25 = vrot.slane %v917_v2, 6 }
 0x260   :  { %v921_v4 = vpop.f32.mrf.mxu0  ;;  %v1035_v14 = vadd.f32 %v1033_v9, %v830_v61 }
 0x261   :  { %v837_v5 = vpop.f32.mrf.mxu1 }
 0x262   :  { %v922_v1 = vpop.f32.mrf.mxu0  ;;  %v1039_v23 = vadd.f32 %v1037_v17, %v1035_v14 }
 0x264   :  { %v1043_v29 = vadd.f32 %v1041_v25, %v1039_v23 }
 0x265   :  { %v990_v8 = vpop.f32.mrf.mxu1 }
 0x267   :  { %v991_v11 = vpop.f32.mrf.mxu1 }
 0x269   :  { %v994_v13 = vpop.f32.mrf.mxu1 }
 0x26a   :  { %v1023_v18 = vadd.f32 %v1022_v15, %v994_v13 }
 0x26b   :  { %v996_v16 = vpop.f32.mrf.mxu1 }
 0x26c   :  { %v1025_v19 = vrot.slane %v996_v16, 2 }
 0x26d   :  { %v1000_v21 = vpop.f32.mrf.mxu1 }
 0x26e   :  { %v1027_v22 = vadd.f32 %v1025_v19, %v1023_v18 }
 0x26f   :  { %v1001_v24 = vpop.f32.mrf.mxu1 }
 0x270   :  { %v1028_v26 = vadd.f32 %v1027_v22, %v1009_v20 }
 0x271   :  { %v1004_v27 = vpop.f32.mrf.mxu1 }
 0x272   :  { %v1029_v28 = vmax.f32 %v1028_v26, 0.0  ;;  %v1044_v31 = vadd.f32 %v1043_v29, %v1004_v27 }
 0x273   :  { %v1006_v30 = vpop.f32.mrf.mxu1 }
 0x274   :  { %1030 = vst [vmem:[#allocation8] sm:$0x1] %v1029_v28  ;;  %v1046_v32 = vrot.slane %v1006_v30, 2 }
 0x276   :  { %v1048_v33 = vadd.f32 %v1046_v32, %v1044_v31 }
 0x278   :  { %v1049_v34 = vadd.f32 %v1048_v33, %v1009_v20 }
 0x27a   :  { %v1050_v35 = vmax.f32 %v1049_v34, 0.0 }
 0x27c   :  { %1051 = vst [vmem:[#allocation8 + $0x1] sm:$0x1] %v1050_v35 }
 0x27d   :  { %1328 = shalt.err (!%p1325_p5)
}
 0x27e   :  { %1061 = dma.vmem_to_hbm [thread:$0]  %s1059_s14, 32, %s1499_s5, [#allocation4]  }
 0x27f   :  { %1341 = dma.done.wait [#allocation4], 32  }
 0x280   :  { %1342 = vsyncadd [#allocation4], 4294967264 }
 0x281   :  { %1065 = vsyncpa [#allocation3], 1 }
 0x282   :  { %1066 = vsyncpa [#allocation6], 1 }
 0x283   :  { %1067 = vsyncpa [#allocation4], 1 }

</bundles_post_ra>
